<compile_context>
chip_gen: v7x
topology: tpu7x:2x2x1
jax: 0.10.0
libtpu: 0.0.40
codegen_flags: <defaults>
</compile_context>

<pallas_src>
import functools

import jax
import jax.numpy as jnp
from jax.experimental import pallas as pl
from jax.experimental.pallas import tpu as pltpu


# -----------------------------------------------------------------------------
# Kernel 1: pixel normalization  (x - mean) * inv_std, channel encoded per row
# -----------------------------------------------------------------------------
def _pixel_norm_kernel(x_ref, mean_ref, inv_std_ref, o_ref):
    # x_ref: (N*C, T)  spatial on the lane axis (lane-dense)
    # mean_ref / inv_std_ref: (N*C, 1) per-row constants
    o_ref[...] = (x_ref[...] - mean_ref[...]) * inv_std_ref[...]


def pixel_normalize(images_nchw, pixel_mean, pixel_std):
    """images_nchw: (N, C, H, W) float32.  Returns (N, C, H, W)."""
    N, C, H, W = images_nchw.shape
    HW = H * W
    x = images_nchw.reshape(N * C, HW)                      # pure reshape, no copy
    mean_col = jnp.tile(pixel_mean.reshape(1, C), (N, 1)).reshape(N * C, 1)
    inv_std_col = jnp.tile((1.0 / pixel_std).reshape(1, C), (N, 1)).reshape(N * C, 1)

    T = 128 if HW % 128 == 0 else HW                        # lane-dense column tile
    grid = (HW // T,)
    out = pl.pallas_call(
        _pixel_norm_kernel,
        out_shape=jax.ShapeDtypeStruct((N * C, HW), x.dtype),
        grid=grid,
        in_specs=[
            pl.BlockSpec((N * C, T), lambda j: (0, j)),
            pl.BlockSpec((N * C, 1), lambda j: (0, 0)),
            pl.BlockSpec((N * C, 1), lambda j: (0, 0)),
        ],
        out_specs=pl.BlockSpec((N * C, T), lambda j: (0, j)),
        compiler_params=pltpu.CompilerParams(
            dimension_semantics=("parallel",)),
    )(x, mean_col, inv_std_col)
    return out.reshape(N, C, H, W)


# -----------------------------------------------------------------------------
# Kernel 2: top_layer 3x3/s1/p1 conv as ONE im2col matmul, lane-dense output,
#           with fused global min / max / focal-loss partial reductions.
# -----------------------------------------------------------------------------
def _conv_fused_kernel(p_ref, w_ref, b_ref, o_ref, mn_ref, mx_ref, fl_ref, *,
                       gamma):
    # p_ref: (9*Cin, T)   im2col slab for one (image, spatial-block)
    # w_ref: (Cout, 9*Cin)
    # b_ref: (Cout, 1)
    # o_ref: (Cout, T)    lane-dense output tile (T multiple of 128)
    # mn/mx/fl_ref: (1, 1, 1, 1) per-block partial stats
    acc = jnp.dot(w_ref[...], p_ref[...], preferred_element_type=jnp.float32)
    acc = acc + b_ref[...]
    o_ref[...] = acc.astype(o_ref.dtype)

    # ---- fused reductions on the already-resident tile (no HBM re-read) ----
    mn_ref[...] = jnp.min(acc).reshape(1, 1, 1, 1)
    mx_ref[...] = jnp.max(acc).reshape(1, 1, 1, 1)

    p = jax.nn.sigmoid(acc)
    if float(gamma) == 2.0:
        pg = p * p
    elif float(gamma).is_integer() and gamma >= 0:
        pg = p ** int(gamma)
    else:
        pg = jnp.power(p, gamma)
    # softplus(z) == -log(1 - sigmoid(z)), stable for large positive z
    softplus = jnp.maximum(acc, 0.0) + jnp.log(1.0 + jnp.exp(-jnp.abs(acc)))
    fl_ref[...] = jnp.sum(softplus * pg).reshape(1, 1, 1, 1)


def top_layer_conv_fused(features_nchw, weight_oihw, bias, gamma):
    """3x3/s1/p1 conv.  features: (N, Cin, H, W), weight: (Cout, Cin, 3, 3).

    Returns (logits_flat (N, Cout, H*W), min_partials, max_partials,
             focal_partials) -- stats are per grid-block partials.
    """
    N, Cin, H, W = features_nchw.shape
    Cout = weight_oihw.shape[0]
    HW = H * W

    # im2col in the wrapper: contiguous (N, 9*Cin, H*W) slab (tap = ky*3+kx,
    # flattened together with the channel so it matches weight.reshape below).
    xp = jnp.pad(features_nchw, ((0, 0), (0, 0), (1, 1), (1, 1)))
    taps = [xp[:, :, dy:dy + H, dx:dx + W]
            for dy in range(3) for dx in range(3)]          # 9 x (N,Cin,H,W)
    patches = jnp.stack(taps, axis=2).reshape(N, Cin * 9, HW)
    w_flat = weight_oihw.reshape(Cout, Cin * 9)             # (o, c*9+ky*3+kx)
    b_col = bias.reshape(Cout, 1)

    T = 128 if HW % 128 == 0 else HW                        # lane-dense tile
    gs = HW // T
    grid = (N, gs)

    kernel = functools.partial(_conv_fused_kernel, gamma=gamma)
    logits, mn, mx, fl = pl.pallas_call(
        kernel,
        out_shape=(
            jax.ShapeDtypeStruct((N, Cout, HW), features_nchw.dtype),
            jax.ShapeDtypeStruct((N, gs, 1, 1), jnp.float32),
            jax.ShapeDtypeStruct((N, gs, 1, 1), jnp.float32),
            jax.ShapeDtypeStruct((N, gs, 1, 1), jnp.float32),
        ),
        grid=grid,
        in_specs=[
            pl.BlockSpec((None, Cin * 9, T), lambda n, s: (n, 0, s)),
            pl.BlockSpec((Cout, Cin * 9), lambda n, s: (0, 0)),
            pl.BlockSpec((Cout, 1), lambda n, s: (0, 0)),
        ],
        out_specs=(
            pl.BlockSpec((None, Cout, T), lambda n, s: (n, 0, s)),
            pl.BlockSpec((1, 1, 1, 1), lambda n, s: (n, s, 0, 0)),
            pl.BlockSpec((1, 1, 1, 1), lambda n, s: (n, s, 0, 0)),
            pl.BlockSpec((1, 1, 1, 1), lambda n, s: (n, s, 0, 0)),
        ),
        compiler_params=pltpu.CompilerParams(
            dimension_semantics=("parallel", "parallel")),
    )(patches, w_flat, b_col)
    return logits, mn, mx, fl


# -----------------------------------------------------------------------------
# Kernel 3: Omni.normalize applied with precomputed global min/max
#   (x - min + 1e-4) / (max - min + 1e-4)  ==  x * scale + offset
# -----------------------------------------------------------------------------
def _affine_norm_kernel(x_ref, s_ref, o_ref):
    # x_ref: (BR, cols) lane-dense; s_ref: (1, 2) in SMEM = [scale, offset]
    o_ref[...] = x_ref[...] * s_ref[0, 0] + s_ref[0, 1]


def affine_normalize(x_flat, x_min, x_max, eps=1e-4):
    """x_flat: (rows, cols) with cols lane-dense (multiple of 128 preferred)."""
    rows, cols = x_flat.shape
    inv = 1.0 / (x_max - x_min + eps)
    scale_offset = jnp.stack([inv, (eps - x_min) * inv]).reshape(1, 2)
    scale_offset = scale_offset.astype(jnp.float32)

    BR = 8 if rows % 8 == 0 else rows
    grid = (rows // BR,)
    out = pl.pallas_call(
        _affine_norm_kernel,
        out_shape=jax.ShapeDtypeStruct((rows, cols), x_flat.dtype),
        grid=grid,
        in_specs=[
            pl.BlockSpec((BR, cols), lambda i: (i, 0)),
            pl.BlockSpec(memory_space=pltpu.MemorySpace.SMEM),
        ],
        out_specs=pl.BlockSpec((BR, cols), lambda i: (i, 0)),
        compiler_params=pltpu.CompilerParams(
            dimension_semantics=("parallel",)),
    )(x_flat, scale_offset)
    return out


# -----------------------------------------------------------------------------
# Omni wrapper (deterministic param init, simplified forward)
# -----------------------------------------------------------------------------
class OmniPallas:
    def __init__(self, key, in_channels, num_bases, attn_size,
                 focal_alpha=0.25, focal_gamma=2.0):
        attn_len = num_bases * attn_size * attn_size
        k_w, = jax.random.split(key, 1)
        # torch.nn.init.normal_(weight, std=0.01); bias = 0
        self.top_w = 0.01 * jax.random.normal(
            k_w, (attn_len, in_channels, 3, 3), jnp.float32)
        self.top_b = jnp.zeros((attn_len,), jnp.float32)
        self.pixel_mean = jnp.array([103.530, 116.280, 123.675], jnp.float32)
        self.pixel_std = jnp.array([57.375, 57.120, 58.395], jnp.float32)
        self.focal_alpha = focal_alpha
        self.focal_gamma = focal_gamma

    def forward(self, images_nchw, features_nchw):
        N, Cin, H, W = features_nchw.shape
        Cout = self.top_w.shape[0]

        # 1. pixel normalizer
        norm_images = pixel_normalize(images_nchw, self.pixel_mean,
                                      self.pixel_std)

        # 2. top_layer conv (attention generator handed to the proposal
        #    generator in the real model) + fused min/max/focal partials
        logits_flat, mn_p, mx_p, fl_p = top_layer_conv_fused(
            features_nchw, self.top_w, self.top_b, self.focal_gamma)
        attn_logits = logits_flat.reshape(N, Cout, H, W)    # pure reshape

        # tiny cross-block reductions of the per-block partials (a few scalars)
        x_min = jnp.min(mn_p)
        x_max = jnp.max(mx_p)
        loss_cls = jnp.sum(fl_p) * (1.0 - self.focal_alpha)

        # 3. Omni.normalize applied to the attention logits
        attn_norm = affine_normalize(
            logits_flat.reshape(N * Cout, H * W), x_min, x_max
        ).reshape(N, Cout, H, W)

        return {
            "normalized_images": norm_images,
            "top_layer_out": attn_logits,
            "top_layer_norm": attn_norm,
            "loss_box_cls": loss_cls,
        }


# -----------------------------------------------------------------------------
# main
# -----------------------------------------------------------------------------
if __name__ == "__main__":
    key = jax.random.PRNGKey(0)
    k_img, k_feat, k_mod = jax.random.split(key, 3)

    N, H, W = 2, 16, 16
    in_channels = 8               # stands in for cfg.MODEL.FPN.OUT_CHANNELS
    num_bases, attn_size = 4, 2   # attn_len = 16

    images = 255.0 * jax.random.uniform(k_img, (N, 3, H, W), jnp.float32)
    features = jax.random.normal(k_feat, (N, in_channels, H, W), jnp.float32)

    model = OmniPallas(k_mod, in_channels, num_bases, attn_size)
    out = model.forward(images, features)
    out = jax.tree_util.tree_map(jax.block_until_ready, out)

    # ----------------- reference checks (plain JAX / XLA) -----------------
    ref_norm_img = (images - model.pixel_mean.reshape(1, 3, 1, 1)) \
        / model.pixel_std.reshape(1, 3, 1, 1)
    ref_conv = jax.lax.conv_general_dilated(
        features, model.top_w, window_strides=(1, 1), padding="SAME",
        dimension_numbers=("NCHW", "OIHW", "NCHW")) \
        + model.top_b.reshape(1, -1, 1, 1)
    ref_min, ref_max = ref_conv.min(), ref_conv.max()
    ref_norm = (ref_conv - ref_min + 1e-4) / (ref_max - ref_min + 1e-4)
    p = jax.nn.sigmoid(ref_conv)
    ref_loss = jnp.sum(-jnp.log(1.0 - p) * p ** 2.0) * (1.0 - 0.25)

    assert jnp.allclose(out["normalized_images"], ref_norm_img,
                        atol=1e-4, rtol=1e-4)
    assert jnp.allclose(out["top_layer_out"], ref_conv, atol=1e-4, rtol=1e-4)
    assert jnp.allclose(out["top_layer_norm"], ref_norm, atol=1e-4, rtol=1e-4)
    assert jnp.allclose(out["loss_box_cls"], ref_loss, atol=1e-2, rtol=2e-3)

    print("KERNEL_OK")
</pallas_src>

<mosaic_0001>
module attributes {stable_mosaic.version = 11 : i64} {
  func.func @_pixel_norm_kernel(%arg0: i32, %arg1: memref<6x128xf32, #tpu.memory_space<vmem>>, %arg2: memref<6x1xf32, #tpu.memory_space<vmem>>, %arg3: memref<6x1xf32, #tpu.memory_space<vmem>>, %arg4: memref<6x128xf32, #tpu.memory_space<vmem>>) attributes {dimension_semantics = [#tpu.dimension_semantics<parallel>], iteration_bounds = array<i64: 2>, scalar_prefetch = 0 : i64, scratch_operands = 0 : i64, tpu.core_type = #tpu.core_type<tc>, window_params = [{transform_indices = @transform_0, window_bounds = array<i64: 6, 128>}, {pipeline_mode = #tpu.pipeline_mode<synchronous>, transform_indices = @transform_1, window_bounds = array<i64: 6, 1>}, {pipeline_mode = #tpu.pipeline_mode<synchronous>, transform_indices = @transform_2, window_bounds = array<i64: 6, 1>}, {transform_indices = @transform_3, window_bounds = array<i64: 6, 128>}]} {
    %c0 = arith.constant 0 : index
    %c0_0 = arith.constant 0 : index
    %0 = vector.load %arg1[%c0, %c0_0] : memref<6x128xf32, #tpu.memory_space<vmem>>, vector<6x128xf32>
    %c0_1 = arith.constant 0 : index
    %c0_2 = arith.constant 0 : index
    %1 = vector.load %arg2[%c0_1, %c0_2] : memref<6x1xf32, #tpu.memory_space<vmem>>, vector<6x1xf32>
    %2 = vector.broadcast %1 : vector<6x1xf32> to vector<6x128xf32>
    %3 = arith.subf %0, %2 : vector<6x128xf32>
    %c0_3 = arith.constant 0 : index
    %c0_4 = arith.constant 0 : index
    %4 = vector.load %arg3[%c0_3, %c0_4] : memref<6x1xf32, #tpu.memory_space<vmem>>, vector<6x1xf32>
    %5 = vector.broadcast %4 : vector<6x1xf32> to vector<6x128xf32>
    %6 = arith.mulf %3, %5 : vector<6x128xf32>
    %c0_5 = arith.constant 0 : index
    %c0_6 = arith.constant 0 : index
    %7 = vector.load %arg4[%c0_5, %c0_6] : memref<6x128xf32, #tpu.memory_space<vmem>>, vector<6x128xf32>
    tpu.vector_store %arg4[%c0_5, %c0_6], %6 {strides = array<i32>} : memref<6x128xf32, #tpu.memory_space<vmem>>, vector<6x128xf32>,
    return
  }
  func.func @transform_0(%arg0: i32) -> (i32, i32) {
    %c0_i32 = arith.constant 0 : i32
    %c0_i32_0 = arith.constant 0 : i32
    return %c0_i32, %arg0 : i32, i32
  }
  func.func @transform_1(%arg0: i32) -> (i32, i32) {
    %c0_i32 = arith.constant 0 : i32
    %c0_i32_0 = arith.constant 0 : i32
    %c0_i32_1 = arith.constant 0 : i32
    return %c0_i32, %c0_i32_0 : i32, i32
  }
  func.func @transform_2(%arg0: i32) -> (i32, i32) {
    %c0_i32 = arith.constant 0 : i32
    %c0_i32_0 = arith.constant 0 : i32
    %c0_i32_1 = arith.constant 0 : i32
    return %c0_i32, %c0_i32_0 : i32, i32
  }
  func.func @transform_3(%arg0: i32) -> (i32, i32) {
    %c0_i32 = arith.constant 0 : i32
    %c0_i32_0 = arith.constant 0 : i32
    return %c0_i32, %arg0 : i32, i32
  }
}

</mosaic_0001>

<bundles_post_ra>
// kernel: tpu_custom_call.1
= control target key start
LH: loop header
LB: loop body
LE: loop exit
PB: predicated region body
PF: predicated region fallthrough
CT: control target
= control target key end

     0   :  { %8 = vsyncpa [#allocation3], 0  ;;  %s498_s0 = inlined_call_operand.vmem [shape: f32[6,256], index: 0, kind: input, shape index: {}]   ;;  %s499_s1 = inlined_call_operand.vmem [shape: f32[6,1], index: 1, kind: input, shape index: {}]   ;;  %s500_s2 = inlined_call_operand.vmem [shape: f32[6,1], index: 2, kind: input, shape index: {}]   ;;  %s501_s3 = inlined_call_operand.hbm [shape: f32[6,256], index: 3, kind: output, shape index: {}]  }
   0x1   :  { %10 = vsyncpa [#allocation3 + $0x1], 0  ;;  %s392_s12 = smov 0   ;;  %s394_s13 = smov 0  }
   0x2   :  { %s396_s14 = smov 0   ;;  %s398_s15 = smov 0  }
   0x3 LB: > { %s413_s16 = sadd.s32 4294967295, %s368_s15   ;;  %s255_s17 = sadd.s32 4294967294, %s368_s15   ;;  %s368_s15 = sphi %s398_s15, %s507_s15   ;;  %s364_s14 = sphi %s396_s14, %s506_s14   ;;  %s360_s13 = sphi %s394_s13, %s505_s13   ;;  %s356_s12 = sphi %s392_s12, %s504_s12  }
   0x4   : > { %s417_s18 = sadd.s32 1, %s368_s15   ;;  %s91_s19 = sadd.s32 1, %s364_s14 }
   0x5   : > { %s88_s20 = ssub.s32 %s368_s15, %s417_s18  ;;  %p101_p0 = scmp.ne.s32.totalorder %s364_s14, %s360_s13 }
   0x6   : > { %p89_p1 = scmp.eq.s32.totalorder %s88_s20, 0  ;;  %p102_p2 = scmp.eq.s32.totalorder %s413_s16, 1 }
   0x7   : > { %p107_p3 = scmp.ne.s32.totalorder %s360_s13, %s356_s12  ;;  %p108_p4 = scmp.eq.s32.totalorder %s255_s17, 1 }
   0x8   : > { %s428_s21 = scalar_select %p89_p1, %s364_s14, %s91_s19  }
   0x9   : > { %p430_p5 = por %p102_p2, %p101_p0  ;;  %p434_p6 = por %p108_p4, %p107_p3 }
   0xa   : > { %p258_p7 = scmp.ge.s32.totalorder %s368_s15, 1  ;;  %p139_p8 = scmp.lt.s32.totalorder %s368_s15, 3 }
   0xc   : > { %p140_p9 = pnand %p258_p7, %p139_p8 }
   0xd   : > { %v167_v0 = vld [vmem:[%s499_s1] sm:$0x3f] (!%p140_p9)  ;;  %v370_v1 = vmov (!%p140_p9), 0   ;;  %p162_p10 = scmp.lt.s32.totalorder (!%p140_p9), %s413_s16, 1  ;;  %s159_s29 = sand.u32 (!%p140_p9), 1, %s360_s13  }
   0xe   : > { %143 = sbr.rel (%p140_p9) target bundleno = 163 (0xa3), region = 32  ;;  %305 = vset.pattern.permute.xlu0 (!%p140_p9), %v370_v1  ;;  %v174_v2 = vld [vmem:[%s500_s2] sm:$0x3f] (!%p140_p9)  ;;  %s259_s4 = sshll.u32 (!%p140_p9), %s159_s29, 3 }
   0xf   : > { %170 = vperm.xlu0 (!%p140_p9), %305, %v167_v0   ;;  %s262_s8 = sshll.u32 (!%p140_p9), %s413_s16, 7  ;;  %s161_s9 = scalar_lea.vmem (!%p140_p9), [#allocation2], %s259_s4 }
  0x10   : > { %s196_s10 = sshll.u32 (!%p140_p9), %s161_s9, 4  ;;  %s456_s19 = scalar_lea.hbm (!%p140_p9), %s501_s3, %s262_s8  ;;  %s458_s10 = int_to_ptr.vmem [resolvable:$true] %s196_s10 }
  0x11   : > { %s183_s20 = scalar_lea.sflag (!%p140_p9), [#allocation3], %s159_s29  ;;  %s306_s24 = scalar_lea.vmem (!%p140_p9), %s458_s10, 128 }
  0x12   : > { %p307_p11 = scmp.ne.s32.totalorder (!%p140_p9), %s458_s10, %s306_s24 }
  0x13   : > { %177 = vperm.xlu0 (!%p140_p9), %305, %v174_v2  }
  0x14   : > { %p308_p12 = pnand (!%p140_p9), %p307_p11, %p430_p5 }
  0x15   : > { %s163_s28 = scalar_select %p162_p10, %s413_s16, 1 }
  0x16   : > { %p309_p13 = pneg %p308_p12  ;;  %s371_s16 = smov [#allocation2]  }
  0x17   : > { %s260_s30 = sshll.u32 %s163_s28, 3  ;;  %s310_s25 = sshll.u32 %s371_s16, 4  ;;  %s311_s25 = int_to_ptr.vmem [resolvable:$false] %s310_s25 }
  0x18   : > { %s165_s7 = scalar_lea.vmem %s498_s0, %s260_s30  ;;  %s312_s26 = scalar_lea.vmem %s311_s25, 256 }
  0x19   : > { %v166_v4 = vld [vmem:[%s165_s7] sm:$0x3f]  ;;  %p313_p0 = scmp.lt.s32.totalorder %s458_s10, %s311_s25  ;;  %p314_p1 = scmp.lt.s32.totalorder %s312_s26, %s306_s24 }
  0x1b   : > { %p315_p2 = por %p314_p1, %p313_p0 }
  0x1d   : > { %p316_p3 = pnand %p315_p2, %p309_p13 }
  0x8e   : > { %v171_v3 = vpop.permute.xlu0 %170 }
  0x8f   : > { %v173_v5 = vsub.f32 %v166_v4, %v171_v3 }
  0x92   : > { %v178_v6 = vpop.permute.xlu0 %177 }
  0x93   : > { %v180_v7 = vmul.f32 %v178_v6, %v173_v5 }
  0x95   : > { %181 = vst [vmem:[%s161_s9] sm:$0x3f] %v180_v7 }
  0x96   : > { %319 = shalt.err (!%p316_p3)
}
  0x97   : > { %s320_s27 = scalar_lea.hbm %s456_s19, 128  ;;  %s324_s30 = scalar_lea.hbm %s501_s3, 256 }
  0x98   : > { %p321_p4 = scmp.ne.s32.totalorder %s456_s19, %s320_s27  ;;  %p325_p9 = scmp.lt.u32.totalorder %s456_s19, %s501_s3 }
  0x99   : > { %p326_p10 = scmp.lt.u32.totalorder %s324_s30, %s320_s27  ;;  %p328_p12 = scmp.lt.u32.totalorder %s320_s27, %s456_s19 }
  0x9a   : > { %p322_p7 = pnand %p321_p4, %p430_p5 }
  0x9b   : > { %p327_p11 = por %p326_p10, %p325_p9 }
  0x9c   : > { %p323_p8 = pneg %p322_p7 }
  0x9d   : > { %p329_p13 = por %p328_p12, %p327_p11 }
  0x9f   : > { %p330_p0 = pnand %p329_p13, %p323_p8 }
  0xa1   : > { %333 = shalt.err (!%p330_p0)
}
  0xa2   : > { %265 = dma.vmem_to_hbm [thread:$0]  (%p430_p5), %s458_s10, 128, %s456_s19, %s183_s20  }
  0xa3 PF: > { %p271_p1 = scmp.ge.s32.totalorder %s368_s15, 2  ;;  %s208_s6 = sand.u32 1, %s356_s12  }
  0xa4   : > { %s209_s7 = scalar_lea.sflag [#allocation3], %s208_s6 }
  0xa5   : > { %p268_p2 = pnand %p271_p1, %p434_p6 }
  0xa7   : > { %351 = dma.done.wait (!%p268_p2), %s209_s7, 128  }
  0xa8   : > { %353 = vsyncadd (!%p268_p2), %s209_s7, 4294967168  ;;  %p13_p3 = scmp.ge.s32.totalorder %s417_s18, 4   ;;  %s504_s12 = smov %s360_s13 }
  0xa9   : > { %s505_s13 = smov %s364_s14  ;;  %s506_s14 = smov %s428_s21 }
  0xaa   : > { %s507_s15 = smov %s417_s18  ;;  %15 = sbr.rel (!%p13_p3) target bundleno = 3 (0x3), region = 67 }
  0xb1   :  { %214 = vsyncpa [#allocation3], 1 }
  0xb2   :  { %216 = vsyncpa [#allocation3 + $0x1], 1 }

</bundles_post_ra>
